<compile_context>
chip_gen: v7x
topology: tpu7x:2x2x1
jax: 0.10.0
libtpu: 0.0.40
codegen_flags: <defaults>
</compile_context>

<pallas_src>
import functools

import numpy as np
import jax
import jax.numpy as jnp
from jax.experimental import pallas as pl
from jax.experimental.pallas import tpu as pltpu


def _att_forward_ta_kernel(scaling,
                           meta_ref,       # SMEM (B, 3) int32: [length, lo, hi]
                           enc_ref,        # (T, E)  encoder states
                           sh_ref,         # (T, K)  shifted att_prev stack
                           ap_ref,         # (1, T)  att_prev
                           apsh_ref,       # (1, T)  att_prev shifted right by 1
                           dec_ref,        # (1, D)  decoder state
                           outp_ref,       # (1, O)  previous decoder output
                           tap_ref,        # (1, 1)  transition agent prob
                           wenc_ref,       # (E, A)
                           benc_ref,       # (1, A)
                           wdec_ref,       # (D, A)
                           wfold_ref,      # (K, A)  conv weights folded w/ mlp_att
                           wg_ref,         # (1, A)
                           bg_ref,         # (1, 1)
                           wtac_ref,       # (1, E)  mlp_ta (c slice)
                           wtao_ref,       # (1, O)  mlp_ta (out_prev slice)
                           wtad_ref,       # (1, D)  mlp_ta (dec_z slice)
                           bta_ref,        # (1, 1)
                           c_ref,          # out (1, E)
                           w_ref,          # out (1, T)
                           tap_out_ref):   # out (1, 1)
    b = pl.program_id(0)
    f32 = jnp.float32
    enc = enc_ref[...]
    T = enc.shape[0]

    # Fused (T, A) pre-activation: enc proj + folded conv proj + bias + dec proj.
    row = benc_ref[...] + jnp.dot(dec_ref[...], wdec_ref[...],
                                  preferred_element_type=f32)            # (1, A)
    acc = jnp.dot(enc, wenc_ref[...], preferred_element_type=f32)        # (T, A)
    acc = acc + jnp.dot(sh_ref[...], wfold_ref[...],
                        preferred_element_type=f32)                      # (T, A)
    s = jnp.tanh(acc + row)                                              # (T, A)

    # Energies directly in lane-dense row form: contract A of (1,A) with (T,A).
    e = jax.lax.dot_general(wg_ref[...], s, (((1,), (1,)), ((), ())),
                            preferred_element_type=f32) + bg_ref[...]    # (1, T)

    # Pad mask + optional monotonic attention constraint window [lo, hi).
    length = meta_ref[b, 0]
    lo = meta_ref[b, 1]
    hi = meta_ref[b, 2]
    t_idx = jax.lax.broadcasted_iota(jnp.int32, (1, T), 1)
    valid = (t_idx < length) & (t_idx >= lo) & (t_idx < hi)

    neg_inf = f32(-jnp.inf)
    scaled = jnp.where(valid, f32(scaling) * e, neg_inf)
    m = jnp.max(scaled, axis=1, keepdims=True)
    m = jnp.where(m > neg_inf, m, f32(0.0))          # guard fully-masked rows
    p = jnp.where(valid, jnp.exp(scaled - m), f32(0.0))
    denom = jnp.maximum(jnp.sum(p, axis=1, keepdims=True), f32(1e-30))
    sm = p * pl.reciprocal(denom, approx=True)                           # (1, T)

    # Forward attention: blend with shifted previous weights, clamp, renormalize.
    tap = tap_ref[...]                                                   # (1, 1)
    blend = (tap * ap_ref[...] + (1.0 - tap) * apsh_ref[...]) * sm
    blend = jnp.maximum(blend, f32(1e-6))
    w = blend * pl.reciprocal(jnp.sum(blend, axis=1, keepdims=True),
                              approx=True)                               # (1, T)

    # Context vector on the MXU: (1, T) @ (T, E).
    c = jnp.dot(w.astype(enc.dtype), enc, preferred_element_type=f32)    # (1, E)

    # Transition agent update: sigmoid(W_ta . [c; out_prev; dec_z] + b_ta).
    ta = (jnp.sum(c * wtac_ref[...], axis=1, keepdims=True)
          + jnp.sum(outp_ref[...] * wtao_ref[...], axis=1, keepdims=True)
          + jnp.sum(dec_ref[...].astype(f32) * wtad_ref[...], axis=1,
                    keepdims=True)
          + bta_ref[...])
    tap_out_ref[...] = (1.0 / (1.0 + jnp.exp(-ta))).astype(tap_out_ref.dtype)
    c_ref[...] = c.astype(c_ref.dtype)
    w_ref[...] = w.astype(w_ref.dtype)


def att_forward_ta(enc_hs_pad, enc_hs_len, dec_z, att_prev, out_prev, params,
                   trans_agent_prob=0.5, scaling=1.0, last_attended_idx=None,
                   backward_window=1, forward_window=3, use_bf16=False):
    """Pallas implementation of AttForwardTA.forward.

    Returns (c, w, new_trans_agent_prob); the PyTorch module stores the last
    value on self.trans_agent_prob, here it is returned explicitly (in f32,
    as is w, so the recurrent state does not lose precision).
    """
    enc_hs_pad = jnp.asarray(enc_hs_pad)
    B, T, E = enc_hs_pad.shape
    W_enc, b_enc = params["W_enc"], params["b_enc"]
    W_dec = params["W_dec"]
    W_att = params["W_att"]
    conv_w = params["conv_w"]                       # (C, 1, 1, K)  (OIHW)
    w_g, b_g = params["w_g"], params["b_g"]
    W_ta, b_ta = params["W_ta"], params["b_ta"]

    A = W_enc.shape[1]
    D = W_dec.shape[0]
    K = conv_w.shape[3]
    F_ = (K - 1) // 2
    out_prev = jnp.asarray(out_prev)
    O = out_prev.shape[-1]

    lens = jnp.asarray(enc_hs_len, jnp.int32).reshape(B)

    if dec_z is None:
        dec_z = jnp.zeros((B, D), enc_hs_pad.dtype)
    dec_z = jnp.asarray(dec_z).reshape(B, D)
    out_prev = out_prev.reshape(B, O)

    if att_prev is None:
        att_prev = jnp.zeros((B, T), jnp.float32).at[:, 0].set(1.0)
    att_prev = jnp.asarray(att_prev, jnp.float32).reshape(B, T)

    tap = jnp.asarray(trans_agent_prob, jnp.float32)
    if tap.ndim == 0:
        tap = jnp.full((B, 1), tap, jnp.float32)
    else:
        tap = jnp.broadcast_to(tap.reshape(B, -1)[:, :1], (B, 1))

    # Monotonic attention constraint window [lo, hi).
    if last_attended_idx is None:
        lo, hi = 0, T
    else:
        lo = max(int(last_attended_idx) - backward_window, 0)
        hi = min(int(last_attended_idx) + forward_window, T)
    meta = jnp.stack([lens,
                      jnp.full((B,), lo, jnp.int32),
                      jnp.full((B,), hi, jnp.int32)], axis=1)            # (B, 3)

    # Fold loc_conv into mlp_att: Wfold[j, a] = sum_c conv[c, j] * W_att[c, a].
    w_fold = jnp.einsum("cj,ca->ja", conv_w[:, 0, 0, :], W_att)          # (K, A)

    # Wrapper-built stack of width-shifted att_prev copies (zero runtime
    # data movement in-kernel): shifted[b, t, j] = att_prev[b, t + j - F].
    ap_pad = jnp.pad(att_prev, ((0, 0), (F_, F_)))
    shifted = jnp.stack([ap_pad[:, j:j + T] for j in range(K)], axis=-1)  # (B,T,K)

    ap_row = att_prev[:, None, :]                                        # (B, 1, T)
    ap_shift = jnp.pad(att_prev, ((0, 0), (1, 0)))[:, :T][:, None, :]    # (B, 1, T)

    mm_dtype = jnp.bfloat16 if use_bf16 else jnp.float32
    enc_in = enc_hs_pad.astype(mm_dtype)
    sh_in = shifted.astype(mm_dtype)
    dec_in = dec_z[:, None, :].astype(mm_dtype)                          # (B, 1, D)
    wenc_in = W_enc.astype(mm_dtype)
    wdec_in = W_dec.astype(mm_dtype)
    wfold_in = w_fold.astype(mm_dtype)

    outp_in = out_prev[:, None, :].astype(jnp.float32)                   # (B, 1, O)
    tap_in = tap[:, :, None]                                             # (B, 1, 1)

    benc_row = b_enc.reshape(1, A).astype(jnp.float32)
    wg_row = w_g.reshape(1, A).astype(jnp.float32)
    bg_11 = b_g.reshape(1, 1).astype(jnp.float32)
    wtac_row = W_ta[:E, 0].reshape(1, E).astype(jnp.float32)
    wtao_row = W_ta[E:E + O, 0].reshape(1, O).astype(jnp.float32)
    wtad_row = W_ta[E + O:, 0].reshape(1, D).astype(jnp.float32)
    bta_11 = b_ta.reshape(1, 1).astype(jnp.float32)

    kernel = functools.partial(_att_forward_ta_kernel, float(scaling))

    # Explicit VMEM budget (v7x-friendly: cap at 64 MiB).
    itm = jnp.dtype(mm_dtype).itemsize
    est = (2 * (T * E + T * K) * itm
           + 2 * (E * A + D * A + K * A) * itm
           + 8 * T * A * 4
           + 64 * (T + E + A + D + O)
           + (1 << 20))
    vmem_limit = int(min(64 * 1024 * 1024, max(32 * 1024 * 1024, est)))

    grid_spec = pltpu.PrefetchScalarGridSpec(
        num_scalar_prefetch=1,
        grid=(B,),
        in_specs=[
            pl.BlockSpec((None, T, E), lambda b, m: (b, 0, 0)),    # enc
            pl.BlockSpec((None, T, K), lambda b, m: (b, 0, 0)),    # shift stack
            pl.BlockSpec((None, 1, T), lambda b, m: (b, 0, 0)),    # att_prev row
            pl.BlockSpec((None, 1, T), lambda b, m: (b, 0, 0)),    # att_prev shift
            pl.BlockSpec((None, 1, D), lambda b, m: (b, 0, 0)),    # dec_z
            pl.BlockSpec((None, 1, O), lambda b, m: (b, 0, 0)),    # out_prev
            pl.BlockSpec((None, 1, 1), lambda b, m: (b, 0, 0)),    # trans agent prob
            pl.BlockSpec((E, A), lambda b, m: (0, 0)),             # W_enc
            pl.BlockSpec((1, A), lambda b, m: (0, 0)),             # b_enc
            pl.BlockSpec((D, A), lambda b, m: (0, 0)),             # W_dec
            pl.BlockSpec((K, A), lambda b, m: (0, 0)),             # W_fold
            pl.BlockSpec((1, A), lambda b, m: (0, 0)),             # w_g
            pl.BlockSpec((1, 1), lambda b, m: (0, 0)),             # b_g
            pl.BlockSpec((1, E), lambda b, m: (0, 0)),             # W_ta (c)
            pl.BlockSpec((1, O), lambda b, m: (0, 0)),             # W_ta (out_prev)
            pl.BlockSpec((1, D), lambda b, m: (0, 0)),             # W_ta (dec_z)
            pl.BlockSpec((1, 1), lambda b, m: (0, 0)),             # b_ta
        ],
        out_specs=[
            pl.BlockSpec((None, 1, E), lambda b, m: (b, 0, 0)),    # c
            pl.BlockSpec((None, 1, T), lambda b, m: (b, 0, 0)),    # w (lane-dense)
            pl.BlockSpec((None, 1, 1), lambda b, m: (b, 0, 0)),    # new trans prob
        ],
    )

    c3, w3, tap3 = pl.pallas_call(
        kernel,
        grid_spec=grid_spec,
        out_shape=(jax.ShapeDtypeStruct((B, 1, E), enc_hs_pad.dtype),
                   jax.ShapeDtypeStruct((B, 1, T), jnp.float32),
                   jax.ShapeDtypeStruct((B, 1, 1), jnp.float32)),
        compiler_params=pltpu.CompilerParams(
            dimension_semantics=("parallel",),
            vmem_limit_bytes=vmem_limit),
    )(meta, enc_in, sh_in, ap_row, ap_shift, dec_in, outp_in, tap_in,
      wenc_in, benc_row, wdec_in, wfold_in, wg_row, bg_11,
      wtac_row, wtao_row, wtad_row, bta_11)

    return c3[:, 0, :], w3[:, 0, :], tap3[:, 0, :]


def att_forward_ta_reference(enc_hs_pad, enc_hs_len, dec_z, att_prev, out_prev,
                             params, trans_agent_prob=0.5, scaling=1.0,
                             last_attended_idx=None, backward_window=1,
                             forward_window=3):
    """Pure-JAX reference matching the PyTorch forward."""
    B, T, E = enc_hs_pad.shape
    lens = jnp.asarray(enc_hs_len, jnp.int32)
    conv_w = params["conv_w"]
    K = conv_w.shape[3]
    F_ = (K - 1) // 2

    tap = jnp.asarray(trans_agent_prob, jnp.float32)
    if tap.ndim == 0:
        tap = jnp.full((B, 1), tap, jnp.float32)
    else:
        tap = jnp.broadcast_to(tap.reshape(B, -1)[:, :1], (B, 1))

    pre_enc = enc_hs_pad @ params["W_enc"] + params["b_enc"]             # (B,T,A)
    dec_proj = dec_z @ params["W_dec"]                                   # (B,A)

    conv = jax.lax.conv_general_dilated(
        att_prev[:, None, None, :], conv_w, window_strides=(1, 1),
        padding=((0, 0), (F_, F_)),
        dimension_numbers=("NCHW", "OIHW", "NCHW"))                      # (B,C,1,T)
    att_conv = jnp.transpose(conv[:, :, 0, :], (0, 2, 1)) @ params["W_att"]

    e = jnp.tanh(att_conv + pre_enc + dec_proj[:, None, :])              # (B,T,A)
    e = (e @ params["w_g"])[:, :, 0] + params["b_g"][0]                  # (B,T)

    t = jnp.arange(T)[None, :]
    mask = t >= lens[:, None]
    if last_attended_idx is not None:
        lo = max(int(last_attended_idx) - backward_window, 0)
        hi = min(int(last_attended_idx) + forward_window, T)
        mask = mask | (t < lo) | (t >= hi)
    e = jnp.where(mask, -jnp.inf, e)
    sm = jax.nn.softmax(scaling * e, axis=1)

    ap_shift = jnp.pad(att_prev, ((0, 0), (1, 0)))[:, :T]
    w = (tap * att_prev + (1.0 - tap) * ap_shift) * sm
    w = jnp.maximum(w, 1e-6)
    w = w / jnp.sum(w, axis=1, keepdims=True)
    c = jnp.sum(enc_hs_pad * w[:, :, None], axis=1)

    ta_in = jnp.concatenate([c, out_prev, dec_z], axis=1)
    new_tap = jax.nn.sigmoid(ta_in @ params["W_ta"] + params["b_ta"])
    return c, w, new_tap


if __name__ == "__main__":
    B, T = 2, 16
    eunits, dunits, att_dim, odim = 32, 32, 32, 8
    aconv_chans, aconv_filts = 4, 3
    K = 2 * aconv_filts + 1

    key = jax.random.PRNGKey(0)
    ks = jax.random.split(key, 12)

    enc_hs_pad = jax.random.normal(ks[0], (B, T, eunits), jnp.float32)
    dec_z = jax.random.normal(ks[1], (B, dunits), jnp.float32)
    out_prev = jax.random.normal(ks[2], (B, odim), jnp.float32)
    enc_hs_len = jnp.array([16, 11], jnp.int32)

    ap_raw = jax.random.uniform(ks[3], (B, T), jnp.float32)
    valid = (jnp.arange(T)[None, :] < enc_hs_len[:, None]).astype(jnp.float32)
    ap_raw = ap_raw * valid
    att_prev = ap_raw / jnp.sum(ap_raw, axis=-1, keepdims=True)

    params = dict(
        W_enc=0.1 * jax.random.normal(ks[4], (eunits, att_dim), jnp.float32),
        b_enc=0.1 * jax.random.normal(ks[5], (att_dim,), jnp.float32),
        W_dec=0.1 * jax.random.normal(ks[6], (dunits, att_dim), jnp.float32),
        W_att=0.1 * jax.random.normal(ks[7], (aconv_chans, att_dim), jnp.float32),
        conv_w=0.1 * jax.random.normal(ks[8], (aconv_chans, 1, 1, K), jnp.float32),
        w_g=0.1 * jax.random.normal(ks[9], (att_dim, 1), jnp.float32),
        b_g=0.1 * jax.random.normal(ks[10], (1,), jnp.float32),
        W_ta=0.1 * jax.random.normal(ks[11], (eunits + odim + dunits, 1),
                                     jnp.float32),
        b_ta=jnp.zeros((1,), jnp.float32),
    )

    # f32 path
    c, w, tap_new = att_forward_ta(enc_hs_pad, enc_hs_len, dec_z, att_prev,
                                   out_prev, params, trans_agent_prob=0.5,
                                   scaling=1.0)
    jax.block_until_ready((c, w, tap_new))

    c_ref, w_ref, tap_ref = att_forward_ta_reference(
        enc_hs_pad, enc_hs_len, dec_z, att_prev, out_prev, params,
        trans_agent_prob=0.5, scaling=1.0)

    assert np.allclose(np.asarray(c), np.asarray(c_ref), atol=2e-3, rtol=2e-3)
    assert np.allclose(np.asarray(w), np.asarray(w_ref), atol=2e-3, rtol=2e-3)
    assert np.allclose(np.asarray(tap_new), np.asarray(tap_ref),
                       atol=2e-3, rtol=2e-3)

    # bf16 MXU-operand path (v6e/v7x): elementwise math stays f32.
    c16, w16, tap16 = att_forward_ta(enc_hs_pad, enc_hs_len, dec_z, att_prev,
                                     out_prev, params, trans_agent_prob=0.5,
                                     scaling=1.0, use_bf16=True)
    jax.block_until_ready((c16, w16, tap16))
    assert np.allclose(np.asarray(c16), np.asarray(c_ref), atol=3e-2, rtol=3e-2)
    assert np.allclose(np.asarray(w16), np.asarray(w_ref), atol=3e-2, rtol=3e-2)
    assert np.allclose(np.asarray(tap16), np.asarray(tap_ref),
                       atol=3e-2, rtol=3e-2)

    print("KERNEL_OK")
</pallas_src>

<mosaic_0001>
module attributes {stable_mosaic.version = 11 : i64} {
  func.func @_att_forward_ta_kernel(%arg0: i32, %arg1: memref<2x3xi32, #tpu.memory_space<smem>>, %arg2: memref<1x16x32xf32, #tpu.memory_space<vmem>>, %arg3: memref<1x16x7xf32, #tpu.memory_space<vmem>>, %arg4: memref<1x1x16xf32, #tpu.memory_space<vmem>>, %arg5: memref<1x1x16xf32, #tpu.memory_space<vmem>>, %arg6: memref<1x1x32xf32, #tpu.memory_space<vmem>>, %arg7: memref<1x1x8xf32, #tpu.memory_space<vmem>>, %arg8: memref<1x1x1xf32, #tpu.memory_space<vmem>>, %arg9: memref<32x32xf32, #tpu.memory_space<vmem>>, %arg10: memref<1x32xf32, #tpu.memory_space<vmem>>, %arg11: memref<32x32xf32, #tpu.memory_space<vmem>>, %arg12: memref<7x32xf32, #tpu.memory_space<vmem>>, %arg13: memref<1x32xf32, #tpu.memory_space<vmem>>, %arg14: memref<1x1xf32, #tpu.memory_space<vmem>>, %arg15: memref<1x32xf32, #tpu.memory_space<vmem>>, %arg16: memref<1x8xf32, #tpu.memory_space<vmem>>, %arg17: memref<1x32xf32, #tpu.memory_space<vmem>>, %arg18: memref<1x1xf32, #tpu.memory_space<vmem>>, %arg19: memref<1x1x32xf32, #tpu.memory_space<vmem>>, %arg20: memref<1x1x16xf32, #tpu.memory_space<vmem>>, %arg21: memref<1x1x1xf32, #tpu.memory_space<vmem>>) attributes {dimension_semantics = [#tpu.dimension_semantics<parallel>], iteration_bounds = array<i64: 2>, scalar_prefetch = 1 : i64, scratch_operands = 0 : i64, tpu.core_type = #tpu.core_type<tc>, window_params = [{transform_indices = @transform_0, window_bounds = array<i64: 1, 16, 32>}, {transform_indices = @transform_1, window_bounds = array<i64: 1, 16, 7>}, {transform_indices = @transform_2, window_bounds = array<i64: 1, 1, 16>}, {transform_indices = @transform_3, window_bounds = array<i64: 1, 1, 16>}, {transform_indices = @transform_4, window_bounds = array<i64: 1, 1, 32>}, {transform_indices = @transform_5, window_bounds = array<i64: 1, 1, 8>}, {transform_indices = @transform_6, window_bounds = array<i64: 1, 1, 1>}, {pipeline_mode = #tpu.pipeline_mode<synchronous>, transform_indices = @transform_7, window_bounds = array<i64: 32, 32>}, {pipeline_mode = #tpu.pipeline_mode<synchronous>, transform_indices = @transform_8, window_bounds = array<i64: 1, 32>}, {pipeline_mode = #tpu.pipeline_mode<synchronous>, transform_indices = @transform_9, window_bounds = array<i64: 32, 32>}, {pipeline_mode = #tpu.pipeline_mode<synchronous>, transform_indices = @transform_10, window_bounds = array<i64: 7, 32>}, {pipeline_mode = #tpu.pipeline_mode<synchronous>, transform_indices = @transform_11, window_bounds = array<i64: 1, 32>}, {pipeline_mode = #tpu.pipeline_mode<synchronous>, transform_indices = @transform_12, window_bounds = array<i64: 1, 1>}, {pipeline_mode = #tpu.pipeline_mode<synchronous>, transform_indices = @transform_13, window_bounds = array<i64: 1, 32>}, {pipeline_mode = #tpu.pipeline_mode<synchronous>, transform_indices = @transform_14, window_bounds = array<i64: 1, 8>}, {pipeline_mode = #tpu.pipeline_mode<synchronous>, transform_indices = @transform_15, window_bounds = array<i64: 1, 32>}, {pipeline_mode = #tpu.pipeline_mode<synchronous>, transform_indices = @transform_16, window_bounds = array<i64: 1, 1>}, {transform_indices = @transform_17, window_bounds = array<i64: 1, 1, 32>}, {transform_indices = @transform_18, window_bounds = array<i64: 1, 1, 16>}, {transform_indices = @transform_19, window_bounds = array<i64: 1, 1, 1>}]} {
    %c0 = arith.constant 0 : index
    %c0_0 = arith.constant 0 : index
    %c0_1 = arith.constant 0 : index
    %0 = vector.load %arg2[%c0, %c0_0, %c0_1] : memref<1x16x32xf32, #tpu.memory_space<vmem>>, vector<1x16x32xf32>
    %1 = vector.shape_cast %0 : vector<1x16x32xf32> to vector<16x32xf32>
    %c0_2 = arith.constant 0 : index
    %c0_3 = arith.constant 0 : index
    %2 = vector.load %arg10[%c0_2, %c0_3] : memref<1x32xf32, #tpu.memory_space<vmem>>, vector<1x32xf32>
    %c0_4 = arith.constant 0 : index
    %c0_5 = arith.constant 0 : index
    %c0_6 = arith.constant 0 : index
    %3 = vector.load %arg6[%c0_4, %c0_5, %c0_6] : memref<1x1x32xf32, #tpu.memory_space<vmem>>, vector<1x1x32xf32>
    %4 = vector.shape_cast %3 : vector<1x1x32xf32> to vector<1x32xf32>
    %c0_7 = arith.constant 0 : index
    %c0_8 = arith.constant 0 : index
    %5 = vector.load %arg11[%c0_7, %c0_8] : memref<32x32xf32, #tpu.memory_space<vmem>>, vector<32x32xf32>
    %cst = arith.constant dense<0.000000e+00> : vector<1x32xf32>
    %6 = tpu.matmul %4, %5, %cst {dimension_numbers = #tpu.dot_dimension_numbers<[1], [0], [0], [1], [0, 0, 1, 1], [], []>} : vector<1x32xf32>, vector<32x32xf32>, vector<1x32xf32> -> vector<1x32xf32>
    %7 = arith.addf %2, %6 : vector<1x32xf32>
    %c0_9 = arith.constant 0 : index
    %c0_10 = arith.constant 0 : index
    %8 = vector.load %arg9[%c0_9, %c0_10] : memref<32x32xf32, #tpu.memory_space<vmem>>, vector<32x32xf32>
    %cst_11 = arith.constant dense<0.000000e+00> : vector<16x32xf32>
    %9 = tpu.matmul %1, %8, %cst_11 {dimension_numbers = #tpu.dot_dimension_numbers<[1], [0], [0], [1], [0, 0, 1, 1], [], []>} : vector<16x32xf32>, vector<32x32xf32>, vector<16x32xf32> -> vector<16x32xf32>
    %c0_12 = arith.constant 0 : index
    %c0_13 = arith.constant 0 : index
    %c0_14 = arith.constant 0 : index
    %10 = vector.load %arg3[%c0_12, %c0_13, %c0_14] : memref<1x16x7xf32, #tpu.memory_space<vmem>>, vector<1x16x7xf32>
    %11 = vector.shape_cast %10 : vector<1x16x7xf32> to vector<16x7xf32>
    %c0_15 = arith.constant 0 : index
    %c0_16 = arith.constant 0 : index
    %12 = vector.load %arg12[%c0_15, %c0_16] : memref<7x32xf32, #tpu.memory_space<vmem>>, vector<7x32xf32>
    %cst_17 = arith.constant dense<0.000000e+00> : vector<16x32xf32>
    %13 = tpu.matmul %11, %12, %cst_17 {dimension_numbers = #tpu.dot_dimension_numbers<[1], [0], [0], [1], [0, 0, 1, 1], [], []>} : vector<16x7xf32>, vector<7x32xf32>, vector<16x32xf32> -> vector<16x32xf32>
    %14 = arith.addf %9, %13 : vector<16x32xf32>
    %15 = vector.broadcast %7 : vector<1x32xf32> to vector<16x32xf32>
    %16 = arith.addf %14, %15 : vector<16x32xf32>
    %17 = math.tanh %16 : vector<16x32xf32>
    %c0_18 = arith.constant 0 : index
    %c0_19 = arith.constant 0 : index
    %18 = vector.load %arg13[%c0_18, %c0_19] : memref<1x32xf32, #tpu.memory_space<vmem>>, vector<1x32xf32>
    %cst_20 = arith.constant dense<0.000000e+00> : vector<1x16xf32>
    %19 = tpu.matmul %18, %17, %cst_20 {dimension_numbers = #tpu.dot_dimension_numbers<[1], [1], [0], [0], [0, 0, 1, 0], [], []>} : vector<1x32xf32>, vector<16x32xf32>, vector<1x16xf32> -> vector<1x16xf32>
    %c0_21 = arith.constant 0 : index
    %c0_22 = arith.constant 0 : index
    %20 = vector.load %arg14[%c0_21, %c0_22] : memref<1x1xf32, #tpu.memory_space<vmem>>, vector<1x1xf32>
    %21 = vector.broadcast %20 : vector<1x1xf32> to vector<1x16xf32>
    %22 = arith.addf %19, %21 : vector<1x16xf32>
    %23 = arith.index_cast %arg0 : i32 to index
    %c0_23 = arith.constant 0 : index
    %24 = memref.load %arg1[%23, %c0_23] : memref<2x3xi32, #tpu.memory_space<smem>>
    %25 = arith.index_cast %arg0 : i32 to index
    %c1 = arith.constant 1 : index
    %26 = memref.load %arg1[%25, %c1] : memref<2x3xi32, #tpu.memory_space<smem>>
    %27 = arith.index_cast %arg0 : i32 to index
    %c2 = arith.constant 2 : index
    %28 = memref.load %arg1[%27, %c2] : memref<2x3xi32, #tpu.memory_space<smem>>
    %29 = tpu.iota {dimensions = array<i32: 1>} : vector<1x16xi32>
    %30 = vector.broadcast %24 : i32 to vector<1x16xi32>
    %31 = arith.cmpi slt, %29, %30 : vector<1x16xi32>
    %32 = vector.broadcast %26 : i32 to vector<1x16xi32>
    %33 = arith.cmpi sge, %29, %32 : vector<1x16xi32>
    %34 = arith.andi %31, %33 : vector<1x16xi1>
    %35 = vector.broadcast %28 : i32 to vector<1x16xi32>
    %36 = arith.cmpi slt, %29, %35 : vector<1x16xi32>
    %37 = arith.andi %34, %36 : vector<1x16xi1>
    %cst_24 = arith.constant 1.000000e+00 : f32
    %38 = vector.broadcast %cst_24 : f32 to vector<1x16xf32>
    %39 = arith.mulf %38, %22 : vector<1x16xf32>
    %cst_25 = arith.constant 0xFF800000 : f32
    %40 = vector.broadcast %cst_25 : f32 to vector<1x16xf32>
    %41 = arith.select %37, %39, %40 : vector<1x16xi1>, vector<1x16xf32>
    %cst_26 = arith.constant dense<0xFF800000> : vector<1xf32>
    %42 = vector.multi_reduction <maximumf>, %41, %cst_26 [1] : vector<1x16xf32> to vector<1xf32>
    %43 = vector.shape_cast %42 : vector<1xf32> to vector<1x1xf32>
    %cst_27 = arith.constant 0xFF800000 : f32
    %44 = vector.broadcast %cst_27 : f32 to vector<1x1xf32>
    %45 = arith.cmpf ogt, %43, %44 : vector<1x1xf32>
    %cst_28 = arith.constant 0.000000e+00 : f32
    %46 = vector.broadcast %cst_28 : f32 to vector<1x1xf32>
    %47 = arith.select %45, %43, %46 : vector<1x1xi1>, vector<1x1xf32>
    %48 = vector.broadcast %47 : vector<1x1xf32> to vector<1x16xf32>
    %49 = arith.subf %41, %48 : vector<1x16xf32>
    %50 = math.exp %49 : vector<1x16xf32>
    %cst_29 = arith.constant 0.000000e+00 : f32
    %51 = vector.broadcast %cst_29 : f32 to vector<1x16xf32>
    %52 = arith.select %37, %50, %51 : vector<1x16xi1>, vector<1x16xf32>
    %cst_30 = arith.constant dense<0.000000e+00> : vector<1xf32>
    %53 = vector.multi_reduction <add>, %52, %cst_30 [1] : vector<1x16xf32> to vector<1xf32>
    %54 = vector.shape_cast %53 : vector<1xf32> to vector<1x1xf32>
    %cst_31 = arith.constant 1.000000e-30 : f32
    %55 = vector.broadcast %cst_31 : f32 to vector<1x1xf32>
    %56 = arith.maximumf %54, %55 : vector<1x1xf32>
    %57 = tpu.reciprocal %56 {approx = true} : vector<1x1xf32> -> vector<1x1xf32>
    %58 = vector.broadcast %57 : vector<1x1xf32> to vector<1x16xf32>
    %59 = arith.mulf %52, %58 : vector<1x16xf32>
    %c0_32 = arith.constant 0 : index
    %c0_33 = arith.constant 0 : index
    %c0_34 = arith.constant 0 : index
    %60 = vector.load %arg8[%c0_32, %c0_33, %c0_34] : memref<1x1x1xf32, #tpu.memory_space<vmem>>, vector<1x1x1xf32>
    %61 = vector.shape_cast %60 : vector<1x1x1xf32> to vector<1x1xf32>
    %c0_35 = arith.constant 0 : index
    %c0_36 = arith.constant 0 : index
    %c0_37 = arith.constant 0 : index
    %62 = vector.load %arg4[%c0_35, %c0_36, %c0_37] : memref<1x1x16xf32, #tpu.memory_space<vmem>>, vector<1x1x16xf32>
    %63 = vector.shape_cast %62 : vector<1x1x16xf32> to vector<1x16xf32>
    %64 = vector.broadcast %61 : vector<1x1xf32> to vector<1x16xf32>
    %65 = arith.mulf %64, %63 : vector<1x16xf32>
    %cst_38 = arith.constant 1.000000e+00 : f32
    %66 = vector.broadcast %cst_38 : f32 to vector<1x1xf32>
    %67 = arith.subf %66, %61 : vector<1x1xf32>
    %c0_39 = arith.constant 0 : index
    %c0_40 = arith.constant 0 : index
    %c0_41 = arith.constant 0 : index
    %68 = vector.load %arg5[%c0_39, %c0_40, %c0_41] : memref<1x1x16xf32, #tpu.memory_space<vmem>>, vector<1x1x16xf32>
    %69 = vector.shape_cast %68 : vector<1x1x16xf32> to vector<1x16xf32>
    %70 = vector.broadcast %67 : vector<1x1xf32> to vector<1x16xf32>
    %71 = arith.mulf %70, %69 : vector<1x16xf32>
    %72 = arith.addf %65, %71 : vector<1x16xf32>
    %73 = arith.mulf %72, %59 : vector<1x16xf32>
    %cst_42 = arith.constant 9.99999997E-7 : f32
    %74 = vector.broadcast %cst_42 : f32 to vector<1x16xf32>
    %75 = arith.maximumf %73, %74 : vector<1x16xf32>
    %cst_43 = arith.constant dense<0.000000e+00> : vector<1xf32>
    %76 = vector.multi_reduction <add>, %75, %cst_43 [1] : vector<1x16xf32> to vector<1xf32>
    %77 = vector.shape_cast %76 : vector<1xf32> to vector<1x1xf32>
    %78 = tpu.reciprocal %77 {approx = true} : vector<1x1xf32> -> vector<1x1xf32>
    %79 = vector.broadcast %78 : vector<1x1xf32> to vector<1x16xf32>
    %80 = arith.mulf %75, %79 : vector<1x16xf32>
    %cst_44 = arith.constant dense<0.000000e+00> : vector<1x32xf32>
    %81 = tpu.matmul %80, %1, %cst_44 {dimension_numbers = #tpu.dot_dimension_numbers<[1], [0], [0], [1], [0, 0, 1, 1], [], []>} : vector<1x16xf32>, vector<16x32xf32>, vector<1x32xf32> -> vector<1x32xf32>
    %c0_45 = arith.constant 0 : index
    %c0_46 = arith.constant 0 : index
    %82 = vector.load %arg15[%c0_45, %c0_46] : memref<1x32xf32, #tpu.memory_space<vmem>>, vector<1x32xf32>
    %83 = arith.mulf %81, %82 : vector<1x32xf32>
    %cst_47 = arith.constant dense<0.000000e+00> : vector<1xf32>
    %84 = vector.multi_reduction <add>, %83, %cst_47 [1] : vector<1x32xf32> to vector<1xf32>
    %85 = vector.shape_cast %84 : vector<1xf32> to vector<1x1xf32>
    %c0_48 = arith.constant 0 : index
    %c0_49 = arith.constant 0 : index
    %c0_50 = arith.constant 0 : index
    %86 = vector.load %arg7[%c0_48, %c0_49, %c0_50] : memref<1x1x8xf32, #tpu.memory_space<vmem>>, vector<1x1x8xf32>
    %87 = vector.shape_cast %86 : vector<1x1x8xf32> to vector<1x8xf32>
    %c0_51 = arith.constant 0 : index
    %c0_52 = arith.constant 0 : index
    %88 = vector.load %arg16[%c0_51, %c0_52] : memref<1x8xf32, #tpu.memory_space<vmem>>, vector<1x8xf32>
    %89 = arith.mulf %87, %88 : vector<1x8xf32>
    %cst_53 = arith.constant dense<0.000000e+00> : vector<1xf32>
    %90 = vector.multi_reduction <add>, %89, %cst_53 [1] : vector<1x8xf32> to vector<1xf32>
    %91 = vector.shape_cast %90 : vector<1xf32> to vector<1x1xf32>
    %92 = arith.addf %85, %91 : vector<1x1xf32>
    %c0_54 = arith.constant 0 : index
    %c0_55 = arith.constant 0 : index
    %c0_56 = arith.constant 0 : index
    %93 = vector.load %arg6[%c0_54, %c0_55, %c0_56] : memref<1x1x32xf32, #tpu.memory_space<vmem>>, vector<1x1x32xf32>
    %94 = vector.shape_cast %93 : vector<1x1x32xf32> to vector<1x32xf32>
    %c0_57 = arith.constant 0 : index
    %c0_58 = arith.constant 0 : index
    %95 = vector.load %arg17[%c0_57, %c0_58] : memref<1x32xf32, #tpu.memory_space<vmem>>, vector<1x32xf32>
    %96 = arith.mulf %94, %95 : vector<1x32xf32>
    %cst_59 = arith.constant dense<0.000000e+00> : vector<1xf32>
    %97 = vector.multi_reduction <add>, %96, %cst_59 [1] : vector<1x32xf32> to vector<1xf32>
    %98 = vector.shape_cast %97 : vector<1xf32> to vector<1x1xf32>
    %99 = arith.addf %92, %98 : vector<1x1xf32>
    %c0_60 = arith.constant 0 : index
    %c0_61 = arith.constant 0 : index
    %100 = vector.load %arg18[%c0_60, %c0_61] : memref<1x1xf32, #tpu.memory_space<vmem>>, vector<1x1xf32>
    %101 = arith.addf %99, %100 : vector<1x1xf32>
    %cst_62 = arith.constant 0.000000e+00 : f32
    %102 = vector.broadcast %cst_62 : f32 to vector<1x1xf32>
    %103 = arith.subf %102, %101 : vector<1x1xf32>
    %104 = math.exp %103 : vector<1x1xf32>
    %cst_63 = arith.constant 1.000000e+00 : f32
    %105 = vector.broadcast %cst_63 : f32 to vector<1x1xf32>
    %106 = arith.addf %105, %104 : vector<1x1xf32>
    %cst_64 = arith.constant 1.000000e+00 : f32
    %107 = vector.broadcast %cst_64 : f32 to vector<1x1xf32>
    %108 = arith.divf %107, %106 : vector<1x1xf32>
    %c0_65 = arith.constant 0 : index
    %c0_66 = arith.constant 0 : index
    %c0_67 = arith.constant 0 : index
    %109 = vector.load %arg21[%c0_65, %c0_66, %c0_67] : memref<1x1x1xf32, #tpu.memory_space<vmem>>, vector<1x1x1xf32>
    %110 = vector.shape_cast %109 : vector<1x1x1xf32> to vector<1x1xf32>
    %111 = vector.shape_cast %108 : vector<1x1xf32> to vector<1x1x1xf32>
    tpu.vector_store %arg21[%c0_65, %c0_66, %c0_67], %111 {strides = array<i32>} : memref<1x1x1xf32, #tpu.memory_space<vmem>>, vector<1x1x1xf32>,
    %c0_68 = arith.constant 0 : index
    %c0_69 = arith.constant 0 : index
    %c0_70 = arith.constant 0 : index
    %112 = vector.load %arg19[%c0_68, %c0_69, %c0_70] : memref<1x1x32xf32, #tpu.memory_space<vmem>>, vector<1x1x32xf32>
    %113 = vector.shape_cast %112 : vector<1x1x32xf32> to vector<1x32xf32>
    %114 = vector.shape_cast %81 : vector<1x32xf32> to vector<1x1x32xf32>
    tpu.vector_store %arg19[%c0_68, %c0_69, %c0_70], %114 {strides = array<i32>} : memref<1x1x32xf32, #tpu.memory_space<vmem>>, vector<1x1x32xf32>,
    %c0_71 = arith.constant 0 : index
    %c0_72 = arith.constant 0 : index
    %c0_73 = arith.constant 0 : index
    %115 = vector.load %arg20[%c0_71, %c0_72, %c0_73] : memref<1x1x16xf32, #tpu.memory_space<vmem>>, vector<1x1x16xf32>
    %116 = vector.shape_cast %115 : vector<1x1x16xf32> to vector<1x16xf32>
    %117 = vector.shape_cast %80 : vector<1x16xf32> to vector<1x1x16xf32>
    tpu.vector_store %arg20[%c0_71, %c0_72, %c0_73], %117 {strides = array<i32>} : memref<1x1x16xf32, #tpu.memory_space<vmem>>, vector<1x1x16xf32>,
    return
  }
  func.func @transform_0(%arg0: i32, %arg1: memref<2x3xi32, #tpu.memory_space<smem>>) -> (i32, i32, i32) {
    %c0_i32 = arith.constant 0 : i32
    %c0_i32_0 = arith.constant 0 : i32
    %c0_i32_1 = arith.constant 0 : i32
    return %arg0, %c0_i32, %c0_i32_0 : i32, i32, i32
  }
  func.func @transform_1(%arg0: i32, %arg1: memref<2x3xi32, #tpu.memory_space<smem>>) -> (i32, i32, i32) {
    %c0_i32 = arith.constant 0 : i32
    %c0_i32_0 = arith.constant 0 : i32
    %c0_i32_1 = arith.constant 0 : i32
    return %arg0, %c0_i32, %c0_i32_0 : i32, i32, i32
  }
  func.func @transform_2(%arg0: i32, %arg1: memref<2x3xi32, #tpu.memory_space<smem>>) -> (i32, i32, i32) {
    %c0_i32 = arith.constant 0 : i32
    %c0_i32_0 = arith.constant 0 : i32
    %c0_i32_1 = arith.constant 0 : i32
    return %arg0, %c0_i32, %c0_i32_0 : i32, i32, i32
  }
  func.func @transform_3(%arg0: i32, %arg1: memref<2x3xi32, #tpu.memory_space<smem>>) -> (i32, i32, i32) {
    %c0_i32 = arith.constant 0 : i32
    %c0_i32_0 = arith.constant 0 : i32
    %c0_i32_1 = arith.constant 0 : i32
    return %arg0, %c0_i32, %c0_i32_0 : i32, i32, i32
  }
  func.func @transform_4(%arg0: i32, %arg1: memref<2x3xi32, #tpu.memory_space<smem>>) -> (i32, i32, i32) {
    %c0_i32 = arith.constant 0 : i32
    %c0_i32_0 = arith.constant 0 : i32
    %c0_i32_1 = arith.constant 0 : i32
    return %arg0, %c0_i32, %c0_i32_0 : i32, i32, i32
  }
  func.func @transform_5(%arg0: i32, %arg1: memref<2x3xi32, #tpu.memory_space<smem>>) -> (i32, i32, i32) {
    %c0_i32 = arith.constant 0 : i32
    %c0_i32_0 = arith.constant 0 : i32
    %c0_i32_1 = arith.constant 0 : i32
    return %arg0, %c0_i32, %c0_i32_0 : i32, i32, i32
  }
  func.func @transform_6(%arg0: i32, %arg1: memref<2x3xi32, #tpu.memory_space<smem>>) -> (i32, i32, i32) {
    %c0_i32 = arith.constant 0 : i32
    %c0_i32_0 = arith.constant 0 : i32
    %c0_i32_1 = arith.constant 0 : i32
    return %arg0, %c0_i32, %c0_i32_0 : i32, i32, i32
  }
  func.func @transform_7(%arg0: i32, %arg1: memref<2x3xi32, #tpu.memory_space<smem>>) -> (i32, i32) {
    %c0_i32 = arith.constant 0 : i32
    %c0_i32_0 = arith.constant 0 : i32
    %c0_i32_1 = arith.constant 0 : i32
    return %c0_i32, %c0_i32_0 : i32, i32
  }
  func.func @transform_8(%arg0: i32, %arg1: memref<2x3xi32, #tpu.memory_space<smem>>) -> (i32, i32) {
    %c0_i32 = arith.constant 0 : i32
    %c0_i32_0 = arith.constant 0 : i32
    %c0_i32_1 = arith.constant 0 : i32
    return %c0_i32, %c0_i32_0 : i32, i32
  }
  func.func @transform_9(%arg0: i32, %arg1: memref<2x3xi32, #tpu.memory_space<smem>>) -> (i32, i32) {
    %c0_i32 = arith.constant 0 : i32
    %c0_i32_0 = arith.constant 0 : i32
    %c0_i32_1 = arith.constant 0 : i32
    return %c0_i32, %c0_i32_0 : i32, i32
  }
  func.func @transform_10(%arg0: i32, %arg1: memref<2x3xi32, #tpu.memory_space<smem>>) -> (i32, i32) {
    %c0_i32 = arith.constant 0 : i32
    %c0_i32_0 = arith.constant 0 : i32
    %c0_i32_1 = arith.constant 0 : i32
    return %c0_i32, %c0_i32_0 : i32, i32
  }
  func.func @transform_11(%arg0: i32, %arg1: memref<2x3xi32, #tpu.memory_space<smem>>) -> (i32, i32) {
    %c0_i32 = arith.constant 0 : i32
    %c0_i32_0 = arith.constant 0 : i32
    %c0_i32_1 = arith.constant 0 : i32
    return %c0_i32, %c0_i32_0 : i32, i32
  }
  func.func @transform_12(%arg0: i32, %arg1: memref<2x3xi32, #tpu.memory_space<smem>>) -> (i32, i32) {
    %c0_i32 = arith.constant 0 : i32
    %c0_i32_0 = arith.constant 0 : i32
    %c0_i32_1 = arith.constant 0 : i32
    return %c0_i32, %c0_i32_0 : i32, i32
  }
  func.func @transform_13(%arg0: i32, %arg1: memref<2x3xi32, #tpu.memory_space<smem>>) -> (i32, i32) {
    %c0_i32 = arith.constant 0 : i32
    %c0_i32_0 = arith.constant 0 : i32
    %c0_i32_1 = arith.constant 0 : i32
    return %c0_i32, %c0_i32_0 : i32, i32
  }
  func.func @transform_14(%arg0: i32, %arg1: memref<2x3xi32, #tpu.memory_space<smem>>) -> (i32, i32) {
    %c0_i32 = arith.constant 0 : i32
    %c0_i32_0 = arith.constant 0 : i32
    %c0_i32_1 = arith.constant 0 : i32
    return %c0_i32, %c0_i32_0 : i32, i32
  }
  func.func @transform_15(%arg0: i32, %arg1: memref<2x3xi32, #tpu.memory_space<smem>>) -> (i32, i32) {
    %c0_i32 = arith.constant 0 : i32
    %c0_i32_0 = arith.constant 0 : i32
    %c0_i32_1 = arith.constant 0 : i32
    return %c0_i32, %c0_i32_0 : i32, i32
  }
  func.func @transform_16(%arg0: i32, %arg1: memref<2x3xi32, #tpu.memory_space<smem>>) -> (i32, i32) {
    %c0_i32 = arith.constant 0 : i32
    %c0_i32_0 = arith.constant 0 : i32
    %c0_i32_1 = arith.constant 0 : i32
    return %c0_i32, %c0_i32_0 : i32, i32
  }
  func.func @transform_17(%arg0: i32, %arg1: memref<2x3xi32, #tpu.memory_space<smem>>) -> (i32, i32, i32) {
    %c0_i32 = arith.constant 0 : i32
    %c0_i32_0 = arith.constant 0 : i32
    %c0_i32_1 = arith.constant 0 : i32
    return %arg0, %c0_i32, %c0_i32_0 : i32, i32, i32
  }
  func.func @transform_18(%arg0: i32, %arg1: memref<2x3xi32, #tpu.memory_space<smem>>) -> (i32, i32, i32) {
    %c0_i32 = arith.constant 0 : i32
    %c0_i32_0 = arith.constant 0 : i32
    %c0_i32_1 = arith.constant 0 : i32
    return %arg0, %c0_i32, %c0_i32_0 : i32, i32, i32
  }
  func.func @transform_19(%arg0: i32, %arg1: memref<2x3xi32, #tpu.memory_space<smem>>) -> (i32, i32, i32) {
    %c0_i32 = arith.constant 0 : i32
    %c0_i32_0 = arith.constant 0 : i32
    %c0_i32_1 = arith.constant 0 : i32
    return %arg0, %c0_i32, %c0_i32_0 : i32, i32, i32
  }
}

</mosaic_0001>

<bundles_post_ra>
// kernel: tpu_custom_call.1
= control target key start
LH: loop header
LB: loop body
LE: loop exit
PB: predicated region body
PF: predicated region fallthrough
CT: control target
= control target key end

     0   :  { %s2417_s0 = inlined_call_operand.hbm [shape: s32[2,3], index: 0, kind: input, shape index: {}]   ;;  %s2418_s1 = inlined_call_operand.vmem [shape: f32[2,16,32], index: 1, kind: input, shape index: {}]   ;;  %s2419_s2 = inlined_call_operand.vmem [shape: f32[2,16,7], index: 2, kind: input, shape index: {}]   ;;  %s2420_s3 = inlined_call_operand.hbm [shape: f32[2,1,16], index: 3, kind: input, shape index: {}]   ;;  %s2421_s4 = inlined_call_operand.hbm [shape: f32[2,1,16], index: 4, kind: input, shape index: {}]   ;;  %s2422_s5 = inlined_call_operand.vmem [shape: f32[2,1,32], index: 5, kind: input, shape index: {}]   ;;  %s2423_s6 = inlined_call_operand.vmem [shape: f32[2,1,8], index: 6, kind: input, shape index: {}]   ;;  %s2424_s7 = inlined_call_operand.vmem [shape: f32[2,1,1], index: 7, kind: input, shape index: {}]   ;;  %s2425_s8 = inlined_call_operand.vmem [shape: f32[32,32], index: 8, kind: input, shape index: {}]   ;;  %s2426_s9 = inlined_call_operand.vmem [shape: f32[1,32], index: 9, kind: input, shape index: {}]   ;;  %s2427_s10 = inlined_call_operand.hbm [shape: f32[32,32], index: 10, kind: input, shape index: {}]   ;;  %s2428_s11 = inlined_call_operand.vmem [shape: f32[7,32], index: 11, kind: input, shape index: {}]   ;;  %s2429_s12 = inlined_call_operand.vmem [shape: f32[1,32], index: 12, kind: input, shape index: {}]   ;;  %s2430_s14 = inlined_call_operand.vmem [shape: f32[1,32], index: 14, kind: input, shape index: {}]   ;;  %s2431_s15 = inlined_call_operand.vmem [shape: f32[1,8], index: 15, kind: input, shape index: {}]   ;;  %s2432_s16 = inlined_call_operand.vmem [shape: f32[1,32], index: 16, kind: input, shape index: {}]   ;;  %s2433_s18 = inlined_call_operand.hbm [shape: f32[2,1,32], index: 18, kind: output, shape index: {0}]   ;;  %s2434_s19 = inlined_call_operand.hbm [shape: f32[2,1,16], index: 19, kind: output, shape index: {1}]   ;;  %s2435_s20 = inlined_call_operand.vmem [shape: f32[2,1,1], index: 20, kind: output, shape index: {2}]   ;;  %s2436_s13 = inlined_call_operand.<no memory space> [shape: f32[1,1], index: 13, kind: input, shape index: {}]   ;;  %s2437_s17 = inlined_call_operand.<no memory space> [shape: f32[1,1], index: 17, kind: input, shape index: {}]  }
   0x1   :  { %2455 = sst [smem:[#allocation27_spill]] %s2417_s0 }
   0x2   :  { %2456 = sst [smem:[#allocation28_spill]] %s2418_s1  ;;  %s2466_s23 = sld [smem:[#allocation27_spill]] }
   0x3   :  { %2457 = sst [smem:[#allocation29_spill]] %s2419_s2 }
   0x4   :  { %2458 = sst [smem:[#allocation30_spill]] %s2420_s3 }
   0x5   :  { %2459 = sst [smem:[#allocation31_spill]] %s2421_s4 }
   0x6   :  { %2460 = sst [smem:[#allocation32_spill]] %s2422_s5 }
   0x7   :  { %2461 = sst [smem:[#allocation33_spill]] %s2427_s10 }
   0x8   :  { %2462 = sst [smem:[#allocation34_spill]] %s2430_s14  ;;  %s1728_s14 = scalar_lea.hbm %s2466_s23, 32 }
   0x9   :  { %2463 = sst [smem:[#allocation35_spill]] %s2433_s18  ;;  %p1729_p0 = scmp.ne.s32.totalorder %s2466_s23, %s1728_s14 }
   0xa   :  { %2464 = sst [smem:[#allocation36_spill]] %s2434_s19  ;;  %p1732_p1 = scmp.lt.u32.totalorder %s1728_s14, %s2466_s23 }
   0xb   :  { %2465 = sst [smem:[#allocation37_spill]] %s2435_s20 }
   0xc   :  { %p1734_p2 = pnand %p1732_p1, %p1729_p0 }
   0xe   :  { %1737 = shalt.err (!%p1734_p2)  }
   0xf   :  { %s1936_s26 = smov [#allocation3]   ;;  %v28_v0 = vstv %s2436_s13  ;;  %v30_v1 = vstv %s2437_s17 }
  0x10   :  { %27 = dma.hbm_to_smem %s2466_s23, 32, %s1936_s26, [#allocation2]  ;;  %29 = vst [vmem:[#allocation4] sm:$0x1] %v28_v0  ;;  %31 = vst [vmem:[#allocation5] sm:$0x1] %v30_v1 }
  0x11   :  { %1898 = dma.done.wait [#allocation2], 32 }
  0x12   :  { %1899 = vsyncadd [#allocation2], 4294967264 }
  0x13   :  { %33 = sfence }
  0x14   :  { %34 = vsyncpa [#allocation7], 0 }
  0x15   :  { %36 = vsyncpa [#allocation7 + $0x1], 0 }
  0x16   :  { %37 = vsyncpa [#allocation10], 0 }
  0x17   :  { %39 = vsyncpa [#allocation10 + $0x1], 0 }
  0x18   :  { %40 = vsyncpa [#allocation8], 0 }
  0x19   :  { %42 = vsyncpa [#allocation8 + $0x1], 0 }
  0x1a   :  { %43 = vsyncpa [#allocation14], 0 }
  0x1b   :  { %45 = vsyncpa [#allocation14 + $0x1], 0  ;;  %s2071_s14 = smov 0   ;;  %s2073_s13 = smov 0  }
  0x1c   :  { %s2075_s21 = smov 0   ;;  %s2077_s17 = smov 0  }
  0x1d LB: > { %2467 = sst [smem:[#allocation21_spill]] %s1922_s14  ;;  %s2092_s1 = sadd.s32 4294967295, %s1934_s17   ;;  %s1934_s17 = sphi %s2077_s17, %s2501_s17   ;;  %s1930_s21 = sphi %s2075_s21, %s2503_s21   ;;  %s1926_s13 = sphi %s2073_s13, %s2505_s13   ;;  %s1922_s14 = sphi %s2071_s14, %s2504_s14  }
  0x1e   : > { %2468 = sst [smem:[#allocation22_spill]] %s1930_s21  ;;  %s1525_s22 = sadd.s32 4294967294, %s1934_s17  }
  0x1f   : > { %p123_p3 = scmp.ne.s32.totalorder %s1926_s13, %s1922_s14  ;;  %p2445_p4 = scmp.eq.s32.totalorder %s2092_s1, 0 }
  0x20   : > { %p467_p6 = scmp.eq.s32.totalorder %s1525_s22, 1  ;;  %p1526_p8 = scmp.ge.s32.totalorder %s1934_s17, 1 }
  0x21   : > { %p2101_p7 = por %p2445_p4, %p123_p3  ;;  %p526_p10 = scmp.lt.s32.totalorder %s1934_s17, 3 }
  0x22   : > { %p2106_p9 = por %p467_p6, %p123_p3  ;;  %s1937_s25 = smov [#allocation11]  }
  0x23   : > { %s2469_s23 = scalar_select %p2101_p7, 1, 0 }
  0x24   : > { %s2470_s24 = scalar_select %p2106_p9, 1, 0 }
  0x25   : > { %p2111_p11 = pnand %p1526_p8, %p526_p10  ;;  %s544_s3 = sshll.u32 %s1937_s25, 4  ;;  %s2115_s3 = int_to_ptr.vmem [resolvable:$true] %s544_s3 }
  0x26   : > { %2471 = sst [smem:[#allocation23_spill]] %s2470_s24  ;;  %s2127_s27 = sadd.s32 1, %s1934_s17  }
  0x27   : > { %s2472_s2 = scalar_select %p2111_p11, 1, 0 }
  0x28   : > { %p1650_p12 = pneg %p2111_p11  ;;  %2474 = sst [smem:[#allocation24_spill]] %s2127_s27 }
  0x29   : > { %s110_s28 = sadd.s32 1, %s1930_s21  ;;  %s107_s4 = ssub.s32 %s1934_s17, %s2127_s27 }
  0x2a   : > { %p2122_p0 = pnand %p1650_p12, %p2445_p4  ;;  %s2475_s10 = sld [smem:[#allocation33_spill]] }
  0x2c   : > { %p1740_p2 = pneg %p2122_p0 }
  0x30   : > { %s1738_s0 = scalar_lea.hbm %s2475_s10, 512 }
  0x31   : > { %p1739_p1 = scmp.ne.s32.totalorder %s2475_s10, %s1738_s0  ;;  %p1745_p8 = scmp.lt.u32.totalorder %s1738_s0, %s2475_s10 }
  0x33   : > { %p1741_p3 = pnand %p1740_p2, %p1739_p1 }
  0x35   : > { %p1742_p6 = pneg %p1741_p3 }
  0x37   : > { %p1747_p10 = pnand %p1745_p8, %p1742_p6 }
  0x39   : > { %1750 = shalt.err (!%p1747_p10)
}
  0x3a   : > { %s1751_s27 = scalar_lea.vmem %s2115_s3, 512  ;;  %p1759_p5 = scmp.lt.s32.totalorder %s2115_s3, %s2115_s3 }
  0x3b   : > { %p1752_p12 = scmp.ne.s32.totalorder %s2115_s3, %s1751_s27  ;;  %p1760_p9 = scmp.lt.s32.totalorder %s1751_s27, %s1751_s27 }
  0x3d   : > { %p1754_p13 = pnand %p1752_p12, %p1740_p2  ;;  %p1761_p7 = por %p1760_p9, %p1759_p5 }
  0x3f   : > { %p1755_p4 = pneg %p1754_p13 }
  0x41   : > { %p1762_p11 = pnand %p1761_p7, %p1755_p4 }
  0x43   : > { %1765 = shalt.err (!%p1762_p11)
}
  0x44   : > { %s1938_s29 = smov 128   ;;  %s1939_s14 = smov 8  }
  0x45   : > { %1653 = dma.hbm_to_vmem [thread:$0]  (!%p2122_p0), %s2475_s10, 512, %s2115_s3, [#allocation10], %s1938_s29, %s1938_s29, %s1939_s14  }
  0x46   : > { %p108_p4 = scmp.eq.s32.totalorder %s107_s4, 0  ;;  %p117_p5 = scmp.ne.s32.totalorder %s1930_s21, %s1926_s13 }
  0x47   : > { %p118_p7 = scmp.eq.s32.totalorder %s1934_s17, 0  ;;  %p1669_p9 = scmp.lt.s32.totalorder %s1934_s17, 2 }
  0x48   : > { %s2158_s27 = scalar_select %p108_p4, %s1930_s21, %s110_s28  }
  0x49   : > { %p119_p11 = por %p118_p7, %p117_p5  ;;  %p2477_p13 = scmp.eq.s32.totalorder %s2092_s1, 1 }
  0x4a   : > { %2476 = sst [smem:[#allocation25_spill]] %s2158_s27  ;;  %s2167_s22 = sand.u32 1, %s1930_s21  }
  0x4b   : > { %p2162_p1 = por %p2477_p13, %p117_p5  ;;  %s1529_s26 = sshll.u32 %s1934_s17, 4 }
  0x4c   : > { %s2480_s3 = sld [smem:[#allocation30_spill]]  ;;  %s598_s28 = scalar_lea.vmem [#allocation6], %s2167_s22 }
  0x4d   : > { %s2478_s0 = scalar_select %p2162_p1, 1, 0 }
  0x4e   : > { %s605_s29 = sshll.u32 %s598_s28, 4  ;;  %p2178_p0 = pnand %p1669_p9, %p119_p11  ;;  %s2176_s29 = int_to_ptr.vmem [resolvable:$true] %s605_s29 }
  0x4f   : > { %2479 = sst [smem:[#allocation26_spill]] %s2478_s0  ;;  %s2482_s25 = sld [smem:[#allocation31_spill]] }
  0x50   : > { %s596_s21 = scalar_lea.sflag [#allocation7], %s2167_s22  ;;  %p1768_p3 = pneg %p2178_p0 }
  0x52   : > { %s2173_s4 = scalar_lea.hbm %s2480_s3, %s1529_s26  ;;  %s1771_s18 = scalar_lea.hbm %s2480_s3, 32 }
  0x53   : > { %s1766_s20 = scalar_lea.hbm %s2173_s4, 16  ;;  %p1772_p10 = scmp.lt.u32.totalorder %s2173_s4, %s2480_s3 }
  0x54   : > { %p1767_p2 = scmp.ne.s32.totalorder %s2173_s4, %s1766_s20  ;;  %p1773_p12 = scmp.lt.u32.totalorder %s1771_s18, %s1766_s20 }
  0x55   : > { %s2186_s24 = scalar_lea.hbm %s2482_s25, %s1529_s26  ;;  %p1775_p5 = scmp.lt.u32.totalorder %s1766_s20, %s2173_s4 }
  0x56   : > { %p1769_p6 = pnand %p1768_p3, %p1767_p2  ;;  %p1774_p4 = por %p1773_p12, %p1772_p10 }
  0x58   : > { %p1770_p8 = pneg %p1769_p6  ;;  %p1776_p7 = por %p1775_p5, %p1774_p4 }
  0x5a   : > { %p1777_p9 = pnand %p1776_p7, %p1770_p8 }
  0x5c   : > { %1780 = shalt.err (!%p1777_p9)
}
  0x5d   : > { %s1781_s10 = scalar_lea.vmem %s2176_s29, 16  ;;  %s1940_s19 = smov [#allocation6]  }
  0x5e   : > { %p1782_p11 = scmp.ne.s32.totalorder %s2176_s29, %s1781_s10  ;;  %s1786_s27 = sshll.u32 %s1940_s19, 4  ;;  %s1787_s27 = int_to_ptr.vmem [resolvable:$false] %s1786_s27 }
  0x5f   : > { %s1788_s0 = scalar_lea.vmem %s1787_s27, 32  ;;  %p1789_p6 = scmp.lt.s32.totalorder %s2176_s29, %s1787_s27 }
  0x60   : > { %p1784_p13 = pnand %p1782_p11, %p1768_p3  ;;  %p1790_p10 = scmp.lt.s32.totalorder %s1788_s0, %s1781_s10 }
  0x62   : > { %p1785_p2 = pneg %p1784_p13  ;;  %p1791_p12 = por %p1790_p10, %p1789_p6 }
  0x64   : > { %p1792_p4 = pnand %p1791_p12, %p1785_p2 }
  0x66   : > { %1795 = shalt.err (!%p1792_p4)
}
  0x67   : > { %1657 = dma.hbm_to_vmem [thread:$0]  (!%p2178_p0), %s2173_s4, 16, %s2176_s29, %s596_s21  }
  0x68   : > { %s615_s18 = scalar_lea.vmem [#allocation9], %s2167_s22  ;;  %s2483_s26 = sand.u32 1, %s1934_s17  }
  0x69   : > { %s622_s20 = sshll.u32 %s615_s18, 4  ;;  %s613_s30 = scalar_lea.sflag [#allocation10], %s2483_s26  ;;  %s623_s20 = int_to_ptr.vmem [resolvable:$true] %s622_s20 }
  0x6a   : > { %s1796_s28 = scalar_lea.hbm %s2186_s24, 16  ;;  %s1801_s27 = scalar_lea.hbm %s2482_s25, 32 }
  0x6b   : > { %p1797_p8 = scmp.ne.s32.totalorder %s2186_s24, %s1796_s28  ;;  %p1802_p9 = scmp.lt.u32.totalorder %s2186_s24, %s2482_s25 }
  0x6c   : > { %p1803_p11 = scmp.lt.u32.totalorder %s1801_s27, %s1796_s28  ;;  %p1805_p2 = scmp.lt.u32.totalorder %s1796_s28, %s2186_s24 }
  0x6d   : > { %p1799_p5 = pnand %p1797_p8, %p1768_p3 }
  0x6e   : > { %p1804_p13 = por %p1803_p11, %p1802_p9 }
  0x6f   : > { %p1800_p7 = pneg %p1799_p5 }
  0x70   : > { %p1806_p6 = por %p1805_p2, %p1804_p13 }
  0x72   : > { %p1807_p10 = pnand %p1806_p6, %p1800_p7 }
  0x74   : > { %1810 = shalt.err (!%p1807_p10)
}
  0x75   : > { %s1811_s21 = scalar_lea.vmem %s623_s20, 16  ;;  %s1941_s22 = smov [#allocation9]  }
  0x76   : > { %p1812_p12 = scmp.ne.s32.totalorder %s623_s20, %s1811_s21  ;;  %s1816_s4 = sshll.u32 %s1941_s22, 4  ;;  %s1817_s4 = int_to_ptr.vmem [resolvable:$false] %s1816_s4 }
  0x77   : > { %s1818_s29 = scalar_lea.vmem %s1817_s4, 32  ;;  %p1819_p5 = scmp.lt.s32.totalorder %s623_s20, %s1817_s4 }
  0x78   : > { %p1814_p4 = pnand %p1812_p12, %p1768_p3  ;;  %p1820_p1 = scmp.lt.s32.totalorder %s1818_s29, %s1811_s21 }
  0x7a   : > { %p1815_p8 = pneg %p1814_p4  ;;  %p1821_p9 = por %p1820_p1, %p1819_p5 }
  0x7c   : > { %p1822_p11 = pnand %p1821_p9, %p1815_p8 }
  0x7e   : > { %1825 = shalt.err (!%p1822_p11)
}
  0x7f   : > { %1660 = dma.hbm_to_vmem [thread:$0]  (!%p2178_p0), %s2186_s24, 16, %s623_s20, %s613_s30  }
  0x80   : > { %p2484_p7 = scmp.ne.s32.totalorder %s2472_s2, 0 }
  0x81   : > { %s2239_s3 = sand.u32 (!%p2484_p7), 1, %s1926_s13   ;;  %p2485_p3 = scmp.ne.s32.totalorder (!%p2484_p7), %s2469_s23, 0 }
  0x82   : > { %649 = sbr.rel (%p2484_p7) target bundleno = 1484 (0x5cc), region = 88  ;;  %s652_s18 = scalar_lea.sflag (!%p2484_p7), [#allocation7], %s2239_s3 }
  0x83   : > { %s654_s26 = scalar_lea.vmem (!%p2484_p7), [#allocation6], %s2239_s3 }
  0x89   : > { %1901 = dma.done.wait (%p2485_p3), %s652_s18, 16  }
  0x8a   : > { %1903 = vsyncadd (%p2485_p3), %s652_s18, 4294967280  ;;  %s659_s14 = sand.u32 1, %s2092_s1   ;;  %s662_s2 = scalar_lea.vmem [#allocation9], %s2239_s3 }
  0x8b   : > { %s660_s24 = scalar_lea.sflag [#allocation10], %s659_s14 }
  0x8c   : > { %1905 = dma.done.wait (%p2485_p3), %s660_s24, 16  }
  0x8d   : > { %1907 = vsyncadd (%p2485_p3), %s660_s24, 4294967280  ;;  %p2486_p1 = scmp.eq.s32.totalorder %s2092_s1, 0 }
  0x8f   : > { %1909 = dma.done.wait (%p2486_p1), [#allocation10], 512   ;;  %p2487_p0 = pmov %p2486_p1 }
  0x90   : > { %p749_p13 = scmp.lt.s32.totalorder %s2092_s1, 1  ;;  %v1942_v2 = vmov 0.0|0.0   ;;  %vm1943_vm0 = vmmov 0   ;;  %v1944_v3 = vmov 0.0   ;;  %vm868_vm1 = vcmask 1046528   ;;  %s2488_s10 = sld [smem:[#allocation29_spill]] }
  0x91   : > { %1911 = vsyncadd (%p2487_p0), [#allocation10], 4294966784  ;;  %1615 = vmatprep.subr.bf16.mxu0 %v1942_v2  ;;  %1582 = vmatprep.mubr.msk.f32.mxu0 %vm1943_vm0, %v1944_v3  ;;  %vm861_vm2 = vcmask 56320   ;;  %v860_v4 = vld [vmem:[%s2428_s11] sm:$0x7f]  ;;  %s2489_s4 = sld [smem:[#allocation28_spill]]  ;;  %v1029_v25 = vlaneseq }
  0x92   : > { %s2259_s20 = scalar_select %p749_p13, %s2092_s1, 1  ;;  %1585 = vmatprep.subr.msk.mxu1 %vm868_vm1, %v860_v4  ;;  %v775_v7 = vld [vmem:[#allocation11] sm:$0xff]  ;;  %v776_v8 = vld [vmem:[#allocation11 + $0x8] sm:$0xff]  ;;  %v777_v12 = vld [vmem:[#allocation11 + $0x10] sm:$0xff]  ;;  %vm779_vm3 = vcmask 261120   ;;  %v1945_v24 = vmov 0  }
  0x93   : > { %1586 = vmatpush3.msk.msra.mxu1 %vm868_vm1, %v860_v4  ;;  %v1616_v9 = vpack.c.bf16 %v776_v8, %v775_v7  ;;  %v854_v10 = vld [vmem:[%s2425_s8] sm:$0xff]  ;;  %v855_v11 = vld [vmem:[%s2425_s8 + $0x8] sm:$0xff]  ;;  %v856_v15 = vld [vmem:[%s2425_s8 + $0x10] sm:$0xff]  ;;  %s2490_s5 = sld [smem:[#allocation32_spill]]  ;;  %1712 = vset.pattern.permute.xlu0 %v1945_v24  ;;  %v1030_v26 = vshrl.u32 %v1029_v25, 7  ;;  %v1135_v42 = vand.u32 127, %v1029_v25 }
  0x94   : > { %s1552_s23 = sshll.u32 %s2259_s20, 4  ;;  %v1621_v13 = vpack.c.bf16 %v855_v11, %v854_v10  ;;  %v778_v14 = vld [vmem:[#allocation11 + $0x18] sm:$0xff]  ;;  %1713 = vset.pattern.permute.xlu1 %v1945_v24  ;;  %vm1631_vm4 = vmpackc.low %vm779_vm3, %vm779_vm3  ;;  %s767_s30 = scalar_lea.vmem %s2424_s7, %s2259_s20  ;;  %vm1145_vm10 = vcmask 122880   ;;  %vm1276_vm12 = vcmask 57344   ;;  %vm1193_vm13 = vcmask 130048  }
  0x95   : > { %v857_v16 = vld [vmem:[%s2425_s8 + $0x18] sm:$0xff]  ;;  %1617 = vmatpush3.bf16.msra.mxu0 %v1616_v9  ;;  %v1619_v17 = vpack.c.bf16 %v778_v14, %v777_v12  ;;  %v1039_v23 = vld [vmem:[#allocation4] sm:$0x1]  ;;  %v2299_v28 = vsub.s32 0, %v1030_v26  ;;  %s2491_s24 = sld [smem:[#allocation34_spill]]  ;;  %vm1269_vm14 = vcmask 253952  }
  0x96   : > { %s758_s19 = scalar_lea.vmem %s2488_s10, %s1552_s23  ;;  %v1625_v18 = vpack.c.bf16 %v857_v16, %v856_v15  ;;  %1622 = vmatprep.subr.bf16.mxu1 %v1621_v13  ;;  %1618 = vmatprep.subr.bf16.mxu0 %v1942_v2  ;;  %v773_v27 = vld [vmem:[%s2426_s9] sm:$0x1]  ;;  %s2493_s22 = sld [smem:[#allocation35_spill]] }
  0x97   : > { %v858_v5 = vld [vmem:[%s758_s19] sm:$0xff]  ;;  %s753_s29 = scalar_lea.vmem %s2489_s4, %s1552_s23  ;;  %v859_v6 = vld [vmem:[%s758_s19 + $0x8] sm:$0xff]  ;;  %1042 = vperm.xlu0 %1712, %v1039_v23   ;;  %s1546_s23 = sshll.u32 %s2092_s1, 7 }
  0x98   : > { %1587 = vmatprep.mubr.msk.f32.mxu1 %vm861_vm2, %v858_v5  ;;  %v771_v19 = vld [vmem:[%s753_s29] sm:$0xff]  ;;  %v772_v21 = vld [vmem:[%s753_s29 + $0x8] sm:$0xff]  ;;  %s1130_s28 = sadd.s32 1, %s1546_s23  ;;  %s1129_s10 = sld [smem:[#allocation3 + %s1546_s23]] }
  0x99   : > { %1588 = vmatmul.mubr.msk.f32.vlgmr.msra.gmra.mrb[0].mxu1 %vm861_vm2, %v859_v6  ;;  %s761_s21 = scalar_lea.vmem %s2490_s5, %s2259_s20  ;;  %1620 = vmatpush3.bf16.msra.mxu0 %v1619_v17  ;;  %v1634_v22 = vpack.c.bf16 %v772_v21, %v771_v19  ;;  %v1038_v40 = vld [vmem:[%s2429_s12] sm:$0x1]  ;;  %s1131_s19 = sld [smem:[#allocation3 + %s1130_s28]] }
  0x9a   : > { %1624 = vmatpush3.bf16.msra.mxu1 %v1621_v13  ;;  %1598 = vmatprep.mubr.msk.f32.mxu1 %vm779_vm3, %v771_v19  ;;  %v2289_v20 = vld [vmem:[%s761_s21] sm:$0x1]  ;;  %s1132_s27 = sadd.s32 2, %s1546_s23  ;;  %s2492_s28 = sld [smem:[#allocation26_spill]] }
  0x9b   : > { %1626 = vmatprep.subr.bf16.mxu1 %v1625_v18  ;;  %1629 = vmatprep.subr.bf16.mxu0 %v1942_v2  ;;  %v1161_v41 = vld [vmem:[%s767_s30] sm:$0x1]  ;;  %s1133_s0 = sld [smem:[#allocation3 + %s1132_s27]]  ;;  %s1300_s4 = scalar_lea.sflag [#allocation8], %s2239_s3 }
  0x9c   : > { %1583 = vmatmul.mubr.msk.f32.vlgmr.msra.gmra.mrb[0].mxu0 %vm779_vm3, %v2289_v20  ;;  %1165 = vperm.xlu1 %1713, %v1161_v41   ;;  %v1173_v60 = vsub.f32 1.0, %v1161_v41  ;;  %v1162_v4 = vld [vmem:[%s654_s26] sm:$0x1]  ;;  %s743_s26 = scalar_lea.vmem [#allocation13], %s2239_s3  ;;  %s1946_s18 = smov [#allocation12]  }
  0x9d   : > { %1605 = vmatprep.mubr.msk.f32.mxu0 %vm1943_vm0, %v1944_v3  ;;  %v1274_v13 = vld [vmem:[%s2431_s15] sm:$0x1]  ;;  %s1830_s14 = sshll.u32 %s1946_s18, 4  ;;  %s1831_s14 = int_to_ptr.vmem [resolvable:$false] %s1830_s14 }
  0x9e   : > { %1628 = vmatpush3.bf16.msra.mxu1 %v1625_v18  ;;  %v1136_v43 = vstv %s1129_s10  ;;  %s737_s10 = scalar_lea.vmem [#allocation12], %s2239_s3 }
  0x9f   : > { %1633 = vmatprep.subr.bf16.mxu1 %v1942_v2  ;;  %v1138_v44 = vstv %s1131_s19  ;;  %vm1137_vm5 = vcmp.lt.s32.totalorder %v1135_v42, %v1136_v43  ;;  %v1174_v2 = vld [vmem:[%s662_s2] sm:$0x1]  ;;  %s764_s2 = scalar_lea.vmem %s2423_s6, %s2259_s20  ;;  %s1548_s19 = sshll.u32 %s2092_s1, 4 }
  0xa0   : > { %vm1139_vm6 = vcmp.ge.s32.totalorder %v1135_v42, %v1138_v44  ;;  %v1273_v14 = vld [vmem:[%s764_s2] sm:$0x1]  ;;  %s1319_s27 = sshll.u32 %s737_s10, 4  ;;  %s2348_s2 = scalar_lea.hbm %s2493_s22, %s1548_s19  ;;  %s1320_s27 = int_to_ptr.vmem [resolvable:$true] %s1319_s27 }
  0xa1   : > { %1599 = vmatmul.mubr.msk.f32.vlgmr.msra.gmra.mrb[0].mxu1 %vm779_vm3, %v772_v21  ;;  %v1141_v46 = vstv %s1133_s0  ;;  %vm1140_vm7 = vmand %vm1137_vm5, %vm1139_vm6  ;;  %v1275_v15 = vmul.f32 %v1274_v13, %v1273_v14  ;;  %v1267_v21 = vld [vmem:[%s2491_s24] sm:$0x1]  ;;  %s1826_s29 = scalar_lea.vmem %s1320_s27, 16  ;;  %p2494_p6 = scmp.ne.s32.totalorder %s2492_s28, 0 }
  0xa2   : > { %1635 = vmatpush3.bf16.msra.mxu1 %v1634_v22  ;;  %1612 = vmatprep.mubr.msk.f32.mxu1 %vm1943_vm0, %v1944_v3  ;;  %vm1142_vm8 = vcmp.lt.s32.totalorder %v1135_v42, %v1141_v46  ;;  %v1281_v22 = vld [vmem:[%s2432_s16] sm:$0x1]  ;;  %p1827_p2 = scmp.ne.s32.totalorder %s1320_s27, %s1826_s29  ;;  %s1832_s24 = scalar_lea.vmem %s1831_s14, 32 }
  0xa3   : > { %vm1143_vm9 = vmand %vm1140_vm7, %vm1142_vm8  ;;  %v1277_v16 = vsel %vm1276_vm12, %v1275_v15, 0.0  ;;  %v1282_v26 = vmul.f32 %v1281_v22, %v2289_v20  ;;  %p1833_p4 = scmp.lt.s32.totalorder %s1320_s27, %s1831_s14  ;;  %p1834_p8 = scmp.lt.s32.totalorder %s1832_s24, %s1826_s29 }
  0xa4   : > { %p1828_p10 = pnand %p1827_p2, %p2494_p6 }
  0xa5   : > { %p1835_p5 = por %p1834_p8, %p1833_p4 }
  0xa6   : > { %p1829_p12 = pneg %p1828_p10 }
  0xa8   : > { %p1836_p9 = pnand %p1835_p5, %p1829_p12 }
 0x116   : > { %v1043_v45 = vpop.permute.xlu0 %1042 }
 0x117   : > { %v1048_v47 = vrot.slane %v1043_v45, %v2299_v28 }
 0x11b   : > { %v1166_v61 = vpop.permute.xlu1 %1165 }
 0x11c   : > { %v1171_v3 = vrot.slane %v1166_v61, %v2299_v28 }
 0x11e   : > { %v1172_v6 = vmul.f32 %v1171_v3, %v1162_v4 }
 0x16f   : > { %v849_v29 = vpop.f32.mrb[0].mxu0 }
 0x170   : > { %v853_v30 = vadd.f32 %v849_v29, %v773_v27  ;;  %v1584_v31 = vpop.f32.mrb[1].mxu0 }
 0x172   : > { %v1032_v33 = vrot.slane %v853_v30, %v2299_v28 }
 0x174   : > { %v1600_v32 = vpop.f32.mrb[0].mxu1 }
 0x175   : > { %v1019_v34 = vpop.f32.mrb[1].mxu1  ;;  %v1035_v35 = vadd.f32 %v1600_v32, %v1032_v33 }
 0x176   : > { %v1034_v36 = vadd.f32 %v1032_v33, %v1019_v34 }
 0x177   : > { %1714 = vtanh.f32 %v1035_v35 }
 0x178   : > { %1716 = vtanh.f32 %v1034_v36 }
 0x181   : > { %v1715_v37 = vpop.eup %1714 }
 0x182   : > { %v1717_v38 = vpop.eup %1716 }
 0x183   : > { %v1630_v39 = vpack.c.bf16 %v1715_v37, %v1717_v38 }
 0x185   : > { %1632 = vmatpush3.bf16.xpose.msk.msra.mxu0 %vm1631_vm4, %v1630_v39 }
 0x18c   : > { %1606 = vmatmul.mubr.msk.f32.vlgmr.msra.gmra.mrb[2].mxu0 %vm779_vm3, %v1038_v40 }
 0x25f   : > { %v1124_v48 = vpop.f32.mrb[2].mxu0 }
 0x260   : > { %v1125_v49 = vadd.f32 %v1124_v48, %v1048_v47  ;;  %v1607_v50 = vpop.f32.mrb[3].mxu0 }
 0x262   : > { %v1144_v51 = vsel %vm1143_vm9, %v1125_v49, -inf }
 0x263   : > { %v1146_v52 = vsel %vm1145_vm10, %v1144_v51, -inf }
 0x264   : > { %1147 = vmax.xlane.f32.xlu0 %v1146_v52 }
 0x268   : > { %1278 = vadd.xlane.f32.xlu0 %v1277_v16 }
 0x2f1   : > { %v1148_v53 = vpop.xlane.xlu0 %1147 }
 0x2f2   : > { %vm1149_vm11 = vcmp.gt.f32.partialorder %v1148_v53, -inf }
 0x2f3   : > { %v1150_v54 = vsel %vm1149_vm11, %v1148_v53, 0.0 }
 0x2f4   : > { %v1151_v55 = vsub.f32 %v1144_v51, %v1150_v54 }
 0x2f6   : > { %v1152_v56 = vmul.f32 1.442695, %v1151_v55 }
 0x2f8   : > { %1718 = vpow2.f32 %v1152_v56 }
 0x302   : > { %v1719_v57 = vpop.eup %1718 }
 0x303   : > { %v1154_v58 = vsel %vm1143_vm9, %v1719_v57, 0.0 }
 0x304   : > { %v1155_v59 = vsel %vm1145_vm10, %v1154_v58, 0.0 }
 0x305   : > { %1156 = vadd.xlane.f32.xlu1 %v1155_v59 }
 0x316   : > { %1177 = vperm.xlu1 %1713, %v1173_v60  }
 0x392   : > { %v1157_v62 = vpop.xlane.xlu1 %1156 }
 0x393   : > { %v1158_v63 = vmax.f32 %v1157_v62, 1e-30 }
 0x395   : > { %1720 = vrcp.f32 %v1158_v63 }
 0x396   : > { %v1178_v0 = vpop.permute.xlu1 %1177 }
 0x397   : > { %v1183_v1 = vrot.slane %v1178_v0, %v2299_v28  ;;  %v1283_v28 = vsel %vm1269_vm14, %v1282_v26, 0.0 }
 0x399   : > { %v1184_v5 = vmul.f32 %v1183_v1, %v1174_v2 }
 0x39b   : > { %v1185_v8 = vadd.f32 %v1184_v5, %v1172_v6 }
 0x39f   : > { %v1721_v7 = vpop.eup %1720 }
 0x3a0   : > { %v1160_v9 = vmul.f32 %v1721_v7, %v1154_v58 }
 0x3a2   : > { %v1186_v10 = vmul.f32 %v1185_v8, %v1160_v9 }
 0x3a4   : > { %v1187_v11 = vmax.f32 %v1186_v10, 1e-06 }
 0x3a6   : > { %v1188_v12 = vsel %vm1145_vm10, %v1187_v11, 0.0 }
 0x3a7   : > { %1189 = vadd.xlane.f32.xlu1 %v1188_v12 }
 0x434   : > { %v1190_v17 = vpop.xlane.xlu1 %1189 }
 0x435   : > { %1722 = vrcp.f32 %v1190_v17 }
 0x43f   : > { %v1723_v18 = vpop.eup %1722 }
 0x440   : > { %v1192_v19 = vmul.f32 %v1723_v18, %v1187_v11 }
 0x442   : > { %1613 = vmatmul.mubr.msk.f32.vlgmr.msra.gmra.mrb[2].mxu1 %vm1193_vm13, %v1192_v19  ;;  %1298 = vst.msk [vmem:[%s743_s26] sm:$0x1] %vm1145_vm10, %v1192_v19 }
 0x515   : > { %v1263_v23 = vpop.f32.mrb[2].mxu1 }
 0x516   : > { %v1268_v24 = vmul.f32 %v1267_v21, %v1263_v23  ;;  %v1614_v25 = vpop.f32.mrb[3].mxu1  ;;  %1297 = vst.msk [vmem:[%s737_s10] sm:$0x1] %vm1269_vm14, %v1263_v23 }
 0x518   : > { %v1270_v27 = vsel %vm1269_vm14, %v1268_v24, 0.0 }
 0x519   : > { %1271 = vadd.xlane.f32.xlu0 %v1270_v27 }
 0x51d   : > { %1284 = vadd.xlane.f32.xlu0 %v1283_v28 }
 0x51e   : > { %1839 = shalt.err (!%p1836_p9)
}
 0x51f   : > { %s1840_s30 = scalar_lea.hbm %s2348_s2, 16  ;;  %s1844_s0 = scalar_lea.hbm %s2493_s22, 32 }
 0x520   : > { %p1841_p11 = scmp.ne.s32.totalorder %s2348_s2, %s1840_s30  ;;  %p1845_p1 = scmp.lt.u32.totalorder %s2348_s2, %s2493_s22 }
 0x521   : > { %p1846_p0 = scmp.lt.u32.totalorder %s1844_s0, %s1840_s30  ;;  %p1848_p2 = scmp.lt.u32.totalorder %s1840_s30, %s2348_s2 }
 0x522   : > { %p1842_p7 = pnand %p1841_p11, %p2494_p6 }
 0x523   : > { %p1847_p13 = por %p1846_p0, %p1845_p1 }
 0x524   : > { %p1843_p3 = pneg %p1842_p7 }
 0x525   : > { %p1849_p10 = por %p1848_p2, %p1847_p13 }
 0x527   : > { %p1850_p12 = pnand %p1849_p10, %p1843_p3 }
 0x529   : > { %1853 = shalt.err (!%p1850_p12)
}
 0x52a   : > { %1646 = dma.vmem_to_hbm [thread:$0]  (%p2494_p6), %s1320_s27, 16, %s2348_s2, %s1300_s4  }
 0x52b   : > { %s2495_s24 = sld [smem:[#allocation36_spill]]  ;;  %s1332_s10 = sshll.u32 %s743_s26, 4  ;;  %s1333_s10 = int_to_ptr.vmem [resolvable:$true] %s1332_s10 }
 0x52c   : > { %s1304_s30 = scalar_lea.sflag [#allocation14], %s2239_s3  ;;  %s1854_s0 = scalar_lea.vmem %s1333_s10, 16 }
 0x52d   : > { %p1855_p4 = scmp.ne.s32.totalorder %s1333_s10, %s1854_s0  ;;  %s1947_s21 = smov [#allocation13]  }
 0x52e   : > { %s1858_s18 = sshll.u32 %s1947_s21, 4  ;;  %s1859_s18 = int_to_ptr.vmem [resolvable:$false] %s1858_s18 }
 0x52f   : > { %p1856_p8 = pnand %p1855_p4, %p2494_p6  ;;  %s1860_s5 = scalar_lea.vmem %s1859_s18, 32 }
 0x530   : > { %p1861_p9 = scmp.lt.s32.totalorder %s1333_s10, %s1859_s18  ;;  %p1862_p11 = scmp.lt.s32.totalorder %s1860_s5, %s1854_s0 }
 0x531   : > { %s2373_s23 = scalar_lea.hbm %s2495_s24, %s1548_s19  ;;  %p1857_p5 = pneg %p1856_p8 }
 0x532   : > { %p1863_p7 = por %p1862_p11, %p1861_p9 }
 0x534   : > { %p1864_p3 = pnand %p1863_p7, %p1857_p5 }
 0x536   : > { %1867 = shalt.err (!%p1864_p3)
}
 0x537   : > { %s1868_s1 = scalar_lea.hbm %s2373_s23, 16  ;;  %s1872_s19 = scalar_lea.hbm %s2495_s24, 32 }
 0x538   : > { %p1869_p1 = scmp.ne.s32.totalorder %s2373_s23, %s1868_s1  ;;  %p1873_p2 = scmp.lt.u32.totalorder %s2373_s23, %s2495_s24 }
 0x539   : > { %p1874_p10 = scmp.lt.u32.totalorder %s1872_s19, %s1868_s1  ;;  %p1876_p4 = scmp.lt.u32.totalorder %s1868_s1, %s2373_s23 }
 0x53a   : > { %p1870_p0 = pnand %p1869_p1, %p2494_p6 }
 0x53b   : > { %p1875_p12 = por %p1874_p10, %p1873_p2 }
 0x53c   : > { %p1871_p13 = pneg %p1870_p0 }
 0x53d   : > { %p1877_p8 = por %p1876_p4, %p1875_p12 }
 0x53f   : > { %p1878_p5 = pnand %p1877_p8, %p1871_p13 }
 0x541   : > { %1881 = shalt.err (!%p1878_p5)
}
 0x542   : > { %1647 = dma.vmem_to_hbm [thread:$0]  (%p2494_p6), %s1333_s10, 16, %s2373_s23, %s1304_s30   ;;  %v1279_v20 = vpop.xlane.xlu0 %1278  ;;  %v1287_v31 = vld [vmem:[#allocation5] sm:$0x1]  ;;  %vm1295_vm15 = vcmask 0  }
 0x543   : > { %s2496_s29 = sld [smem:[#allocation37_spill]] }
 0x549   : > { %s770_s28 = scalar_lea.vmem %s2496_s29, %s2259_s20 }
 0x5a6   : > { %v1272_v29 = vpop.xlane.xlu0 %1271 }
 0x5a7   : > { %v1280_v30 = vadd.f32 %v1279_v20, %v1272_v29 }
 0x5aa   : > { %v1285_v32 = vpop.xlane.xlu0 %1284 }
 0x5ab   : > { %v1286_v33 = vadd.f32 %v1285_v32, %v1280_v30 }
 0x5ad   : > { %v1288_v34 = vadd.f32 %v1287_v31, %v1286_v33 }
 0x5af   : > { %v1289_v35 = vsub.f32 0.0, %v1288_v34 }
 0x5b1   : > { %v1290_v36 = vmul.f32 1.442695, %v1289_v35 }
 0x5b3   : > { %1724 = vpow2.f32 %v1290_v36 }
 0x5bd   : > { %v1725_v37 = vpop.eup %1724 }
 0x5be   : > { %v1292_v38 = vadd.f32 1.0, %v1725_v37 }
 0x5c0   : > { %1726 = vrcp.f32 %v1292_v38 }
 0x5ca   : > { %v1727_v39 = vpop.eup %1726 }
 0x5cb   : > { %1296 = vst.msk [vmem:[%s770_s28] sm:$0x1] %vm1295_vm15, %v1727_v39 }
 0x5cc PF: > { %s2497_s14 = sld [smem:[#allocation21_spill]]  ;;  %s2498_s23 = sld [smem:[#allocation23_spill]] }
 0x5cd   : > { %p2500_p9 = scmp.ge.s32.totalorder %s1934_s17, 2 }
 0x5d2   : > { %s1347_s10 = sand.u32 1, %s2497_s14   ;;  %p2499_p6 = scmp.ne.s32.totalorder %s2498_s23, 0 }
 0x5d3   : > { %s1348_s30 = scalar_lea.sflag [#allocation8], %s1347_s10 }
 0x5d4   : > { %p1662_p11 = pnand %p2500_p9, %p2499_p6 }
 0x5d6   : > { %1913 = dma.done.wait (!%p1662_p11), %s1348_s30, 16  }
 0x5d7   : > { %1915 = vsyncadd (!%p1662_p11), %s1348_s30, 4294967280  ;;  %s1356_s0 = scalar_lea.sflag [#allocation14], %s1347_s10 }
 0x5d8   : > { %1917 = dma.done.wait (!%p1662_p11), %s1356_s0, 16  }
 0x5d9   : > { %1919 = vsyncadd (!%p1662_p11), %s1356_s0, 4294967280  ;;  %s2501_s17 = sld [smem:[#allocation24_spill]]  ;;  %s2502_s20 = sld [smem:[#allocation22_spill]] }
 0x5da   : > { %s2503_s21 = sld [smem:[#allocation25_spill]]  ;;  %s2504_s14 = smov %s1926_s13 }
 0x5df   : > { %p48_p7 = scmp.ge.s32.totalorder %s2501_s17, 4   ;;  %s2505_s13 = smov %s2502_s20 }
 0x5e1   :  { %50 = sbr.rel (!%p48_p7) target bundleno = 29 (0x1d), region = 194 }
 0x5e8   :  { %1366 = vsyncpa [#allocation7], 1 }
 0x5e9   :  { %1368 = vsyncpa [#allocation7 + $0x1], 1 }
 0x5ea   :  { %1369 = vsyncpa [#allocation10], 1 }
 0x5eb   :  { %1371 = vsyncpa [#allocation10 + $0x1], 1 }
 0x5ec   :  { %1372 = vsyncpa [#allocation8], 1 }
 0x5ed   :  { %1374 = vsyncpa [#allocation8 + $0x1], 1 }
 0x5ee   :  { %1375 = vsyncpa [#allocation14], 1 }
 0x5ef   :  { %1377 = vsyncpa [#allocation14 + $0x1], 1 }

</bundles_post_ra>
